<compile_context>
chip_gen: v7x
topology: tpu7x:2x2x1
jax: 0.10.0
libtpu: 0.0.40
codegen_flags: <defaults>
</compile_context>

<pallas_src>
import functools

import jax
import jax.numpy as jnp
import numpy as np
from jax.experimental import pallas as pl
from jax.experimental.pallas import tpu as pltpu

LANE = 128
SUBLANE = 8
MAX_TB = 1024  # rows per grid step upper bound


def _round_up(x, m):
    return (x + m - 1) // m * m


def critic_d4pg_kernel(state_ref, action_ref,
                       w1_ref, b1_ref,
                       w2s_ref, w2a_ref, b2_ref,
                       w3_ref, b3_ref,
                       out_ref):
    # fc1 + relu
    y = jnp.dot(state_ref[...], w1_ref[...], preferred_element_type=jnp.float32)
    y = jnp.maximum(y + b1_ref[...], 0.0)
    # fc2 on concat(y, action) + relu  (concat expressed as sum of two matmuls)
    h = jnp.dot(y, w2s_ref[...], preferred_element_type=jnp.float32)
    h = h + jnp.dot(action_ref[...], w2a_ref[...],
                    preferred_element_type=jnp.float32)
    h = jnp.maximum(h + b2_ref[...], 0.0)
    # fc3: distributional logits over natoms (unpadded lane width)
    z = jnp.dot(h, w3_ref[...], preferred_element_type=jnp.float32)
    out_ref[...] = (z + b3_ref[...]).astype(out_ref.dtype)


def prepare_params(params):
    """One-time zero-padding of hidden widths to a full lane (exact)."""
    w1, b1, w2s, w2a, b2, w3, b3 = params
    H1 = w1.shape[1]
    H2 = w2s.shape[1]
    H1p = _round_up(H1, LANE)
    H2p = _round_up(H2, LANE)
    w1p = jnp.pad(w1, ((0, 0), (0, H1p - H1)))
    b1p = jnp.pad(b1, ((0, 0), (0, H1p - H1)))
    w2sp = jnp.pad(w2s, ((0, H1p - H1), (0, H2p - H2)))
    w2ap = jnp.pad(w2a, ((0, 0), (0, H2p - H2)))
    b2p = jnp.pad(b2, ((0, 0), (0, H2p - H2)))
    w3p = jnp.pad(w3, ((0, H2p - H2), (0, 0)))   # natoms stays unpadded
    b3p = b3
    return (w1p, b1p, w2sp, w2ap, b2p, w3p, b3p)


@jax.jit
def critic_d4pg_forward(state, action, padded_params):
    """state: (B, state_size), action: (B, action_size) -> (B, natoms)."""
    w1p, b1p, w2sp, w2ap, b2p, w3p, b3p = padded_params
    B, S = state.shape
    A = action.shape[1]
    H1p = w1p.shape[1]
    H2p = w2sp.shape[1]
    N = w3p.shape[1]

    # ---- batch tiling: bound padding to <1 tile, keep >=2 steps when B
    #      allows (so v7x's two TensorCores both get work) ------------------
    n_tiles = pl.cdiv(B, MAX_TB)
    if B >= 2 * SUBLANE:
        n_tiles = max(n_tiles, 2)
    TB = _round_up(pl.cdiv(B, n_tiles), SUBLANE)
    Bp = _round_up(B, TB)
    if Bp != B:
        state = jnp.pad(state, ((0, Bp - B), (0, 0)))
        action = jnp.pad(action, ((0, Bp - B), (0, 0)))
    grid = (Bp // TB,)

    def batch_spec(shape):
        return pl.BlockSpec(shape, lambda i: (i, 0))

    def resident(shape):
        return pl.BlockSpec(shape, lambda i: (0, 0))

    flops = 2 * Bp * (S * H1p + H1p * H2p + A * H2p + H2p * N)
    bytes_accessed = 4 * (Bp * (S + A + N)
                          + w1p.size + b1p.size + w2sp.size + w2ap.size
                          + b2p.size + w3p.size + b3p.size)

    out = pl.pallas_call(
        critic_d4pg_kernel,
        out_shape=jax.ShapeDtypeStruct((Bp, N), jnp.float32),
        grid=grid,
        in_specs=[
            batch_spec((TB, S)),
            batch_spec((TB, A)),
            resident((S, H1p)),
            resident((1, H1p)),
            resident((H1p, H2p)),
            resident((A, H2p)),
            resident((1, H2p)),
            resident((H2p, N)),
            resident((1, N)),
        ],
        out_specs=batch_spec((TB, N)),
        compiler_params=pltpu.CompilerParams(
            dimension_semantics=("parallel",)),
        cost_estimate=pl.CostEstimate(
            flops=flops, transcendentals=0, bytes_accessed=bytes_accessed),
    )(state, action, w1p, b1p, w2sp, w2ap, b2p, w3p, b3p)

    # Slice away batch padding only (natoms is already exact).
    return out[:B]


def init_params(key, state_size, action_size,
                fc1_units=64, fc2_units=64, natoms=51):
    """Deterministic init mirroring CriticD4PG.__init__ / reset_parameters:
    weights ~ U(-0.003, 0.003); biases keep PyTorch Linear default
    U(-1/sqrt(fan_in), 1/sqrt(fan_in))."""
    ks = jax.random.split(key, 6)
    w_rng = 0.003

    def uw(k, shape):
        return jax.random.uniform(k, shape, jnp.float32, -w_rng, w_rng)

    def ub(k, shape, fan_in):
        bound = 1.0 / np.sqrt(fan_in)
        return jax.random.uniform(k, shape, jnp.float32, -bound, bound)

    # Weights stored as (in, out) so the kernel does x @ W (torch stores (out, in)).
    w1 = uw(ks[0], (state_size, fc1_units))
    b1 = ub(ks[1], (1, fc1_units), state_size)
    w2 = uw(ks[2], (fc1_units + action_size, fc2_units))
    b2 = ub(ks[3], (1, fc2_units), fc1_units + action_size)
    w3 = uw(ks[4], (fc2_units, natoms))
    b3 = ub(ks[5], (1, natoms), fc2_units)

    w2s = w2[:fc1_units, :]   # part applied to y = relu(fc1(state))
    w2a = w2[fc1_units:, :]   # part applied to action
    return (w1, b1, w2s, w2a, b2, w3, b3)


def reference_forward(state, action, params):
    """Pure-JAX reference matching the PyTorch forward exactly."""
    w1, b1, w2s, w2a, b2, w3, b3 = params
    w2 = jnp.concatenate([w2s, w2a], axis=0)
    y = jax.nn.relu(state @ w1 + b1)
    x = jnp.concatenate([y, action], axis=1)
    x = jax.nn.relu(x @ w2 + b2)
    return x @ w3 + b3


if __name__ == "__main__":
    STATE, ACTION = 16, 4
    FC1, FC2, NATOMS = 64, 64, 51

    key = jax.random.PRNGKey(0)
    k_state, k_action, k_params = jax.random.split(key, 3)
    params = init_params(k_params, STATE, ACTION, FC1, FC2, NATOMS)
    padded_params = jax.tree.map(jax.block_until_ready, prepare_params(params))

    # Small-batch check (single grid step).
    B = 8
    state = jax.random.normal(k_state, (B, STATE), jnp.float32)
    action = jax.random.normal(k_action, (B, ACTION), jnp.float32)
    out = jax.block_until_ready(critic_d4pg_forward(state, action, padded_params))
    ref = reference_forward(state, action, params)
    np.testing.assert_allclose(np.asarray(out), np.asarray(ref),
                               rtol=1e-5, atol=1e-5)
    assert out.shape == (B, NATOMS)

    # Ragged, multi-step check (exercises batch tiling + padding + 2 steps).
    B2 = 600
    state2 = jax.random.normal(k_state, (B2, STATE), jnp.float32)
    action2 = jax.random.normal(k_action, (B2, ACTION), jnp.float32)
    out2 = jax.block_until_ready(critic_d4pg_forward(state2, action2, padded_params))
    ref2 = reference_forward(state2, action2, params)
    np.testing.assert_allclose(np.asarray(out2), np.asarray(ref2),
                               rtol=1e-5, atol=1e-5)
    assert out2.shape == (B2, NATOMS)

    print("KERNEL_OK")
</pallas_src>

<mosaic_0001>
module attributes {stable_mosaic.version = 11 : i64} {
  func.func @critic_d4pg_kernel(%arg0: i32, %arg1: memref<8x16xf32, #tpu.memory_space<vmem>>, %arg2: memref<8x4xf32, #tpu.memory_space<vmem>>, %arg3: memref<16x128xf32, #tpu.memory_space<vmem>>, %arg4: memref<1x128xf32, #tpu.memory_space<vmem>>, %arg5: memref<128x128xf32, #tpu.memory_space<vmem>>, %arg6: memref<4x128xf32, #tpu.memory_space<vmem>>, %arg7: memref<1x128xf32, #tpu.memory_space<vmem>>, %arg8: memref<128x51xf32, #tpu.memory_space<vmem>>, %arg9: memref<1x51xf32, #tpu.memory_space<vmem>>, %arg10: memref<8x51xf32, #tpu.memory_space<vmem>>) attributes {dimension_semantics = [#tpu.dimension_semantics<parallel>], iteration_bounds = array<i64: 1>, scalar_prefetch = 0 : i64, scratch_operands = 0 : i64, tpu.core_type = #tpu.core_type<tc>, window_params = [{transform_indices = @transform_0, window_bounds = array<i64: 8, 16>}, {transform_indices = @transform_1, window_bounds = array<i64: 8, 4>}, {pipeline_mode = #tpu.pipeline_mode<synchronous>, transform_indices = @transform_2, window_bounds = array<i64: 16, 128>}, {pipeline_mode = #tpu.pipeline_mode<synchronous>, transform_indices = @transform_3, window_bounds = array<i64: 1, 128>}, {pipeline_mode = #tpu.pipeline_mode<synchronous>, transform_indices = @transform_4, window_bounds = array<i64: 128, 128>}, {pipeline_mode = #tpu.pipeline_mode<synchronous>, transform_indices = @transform_5, window_bounds = array<i64: 4, 128>}, {pipeline_mode = #tpu.pipeline_mode<synchronous>, transform_indices = @transform_6, window_bounds = array<i64: 1, 128>}, {pipeline_mode = #tpu.pipeline_mode<synchronous>, transform_indices = @transform_7, window_bounds = array<i64: 128, 51>}, {pipeline_mode = #tpu.pipeline_mode<synchronous>, transform_indices = @transform_8, window_bounds = array<i64: 1, 51>}, {transform_indices = @transform_9, window_bounds = array<i64: 8, 51>}]} {
    %c0 = arith.constant 0 : index
    %c0_0 = arith.constant 0 : index
    %0 = vector.load %arg1[%c0, %c0_0] : memref<8x16xf32, #tpu.memory_space<vmem>>, vector<8x16xf32>
    %c0_1 = arith.constant 0 : index
    %c0_2 = arith.constant 0 : index
    %1 = vector.load %arg3[%c0_1, %c0_2] : memref<16x128xf32, #tpu.memory_space<vmem>>, vector<16x128xf32>
    %cst = arith.constant dense<0.000000e+00> : vector<8x128xf32>
    %2 = tpu.matmul %0, %1, %cst {dimension_numbers = #tpu.dot_dimension_numbers<[1], [0], [0], [1], [0, 0, 1, 1], [], []>} : vector<8x16xf32>, vector<16x128xf32>, vector<8x128xf32> -> vector<8x128xf32>
    %c0_3 = arith.constant 0 : index
    %c0_4 = arith.constant 0 : index
    %3 = vector.load %arg4[%c0_3, %c0_4] : memref<1x128xf32, #tpu.memory_space<vmem>>, vector<1x128xf32>
    %4 = vector.broadcast %3 : vector<1x128xf32> to vector<8x128xf32>
    %5 = arith.addf %2, %4 : vector<8x128xf32>
    %cst_5 = arith.constant 0.000000e+00 : f32
    %6 = vector.broadcast %cst_5 : f32 to vector<8x128xf32>
    %7 = arith.maximumf %5, %6 : vector<8x128xf32>
    %c0_6 = arith.constant 0 : index
    %c0_7 = arith.constant 0 : index
    %8 = vector.load %arg5[%c0_6, %c0_7] : memref<128x128xf32, #tpu.memory_space<vmem>>, vector<128x128xf32>
    %cst_8 = arith.constant dense<0.000000e+00> : vector<8x128xf32>
    %9 = tpu.matmul %7, %8, %cst_8 {dimension_numbers = #tpu.dot_dimension_numbers<[1], [0], [0], [1], [0, 0, 1, 1], [], []>} : vector<8x128xf32>, vector<128x128xf32>, vector<8x128xf32> -> vector<8x128xf32>
    %c0_9 = arith.constant 0 : index
    %c0_10 = arith.constant 0 : index
    %10 = vector.load %arg2[%c0_9, %c0_10] : memref<8x4xf32, #tpu.memory_space<vmem>>, vector<8x4xf32>
    %c0_11 = arith.constant 0 : index
    %c0_12 = arith.constant 0 : index
    %11 = vector.load %arg6[%c0_11, %c0_12] : memref<4x128xf32, #tpu.memory_space<vmem>>, vector<4x128xf32>
    %cst_13 = arith.constant dense<0.000000e+00> : vector<8x128xf32>
    %12 = tpu.matmul %10, %11, %cst_13 {dimension_numbers = #tpu.dot_dimension_numbers<[1], [0], [0], [1], [0, 0, 1, 1], [], []>} : vector<8x4xf32>, vector<4x128xf32>, vector<8x128xf32> -> vector<8x128xf32>
    %13 = arith.addf %9, %12 : vector<8x128xf32>
    %c0_14 = arith.constant 0 : index
    %c0_15 = arith.constant 0 : index
    %14 = vector.load %arg7[%c0_14, %c0_15] : memref<1x128xf32, #tpu.memory_space<vmem>>, vector<1x128xf32>
    %15 = vector.broadcast %14 : vector<1x128xf32> to vector<8x128xf32>
    %16 = arith.addf %13, %15 : vector<8x128xf32>
    %cst_16 = arith.constant 0.000000e+00 : f32
    %17 = vector.broadcast %cst_16 : f32 to vector<8x128xf32>
    %18 = arith.maximumf %16, %17 : vector<8x128xf32>
    %c0_17 = arith.constant 0 : index
    %c0_18 = arith.constant 0 : index
    %19 = vector.load %arg8[%c0_17, %c0_18] : memref<128x51xf32, #tpu.memory_space<vmem>>, vector<128x51xf32>
    %cst_19 = arith.constant dense<0.000000e+00> : vector<8x51xf32>
    %20 = tpu.matmul %18, %19, %cst_19 {dimension_numbers = #tpu.dot_dimension_numbers<[1], [0], [0], [1], [0, 0, 1, 1], [], []>} : vector<8x128xf32>, vector<128x51xf32>, vector<8x51xf32> -> vector<8x51xf32>
    %c0_20 = arith.constant 0 : index
    %c0_21 = arith.constant 0 : index
    %21 = vector.load %arg9[%c0_20, %c0_21] : memref<1x51xf32, #tpu.memory_space<vmem>>, vector<1x51xf32>
    %22 = vector.broadcast %21 : vector<1x51xf32> to vector<8x51xf32>
    %23 = arith.addf %20, %22 : vector<8x51xf32>
    %c0_22 = arith.constant 0 : index
    %c0_23 = arith.constant 0 : index
    %24 = vector.load %arg10[%c0_22, %c0_23] : memref<8x51xf32, #tpu.memory_space<vmem>>, vector<8x51xf32>
    tpu.vector_store %arg10[%c0_22, %c0_23], %23 {strides = array<i32>} : memref<8x51xf32, #tpu.memory_space<vmem>>, vector<8x51xf32>,
    return
  }
  func.func @transform_0(%arg0: i32) -> (i32, i32) {
    %c0_i32 = arith.constant 0 : i32
    %c0_i32_0 = arith.constant 0 : i32
    return %arg0, %c0_i32 : i32, i32
  }
  func.func @transform_1(%arg0: i32) -> (i32, i32) {
    %c0_i32 = arith.constant 0 : i32
    %c0_i32_0 = arith.constant 0 : i32
    return %arg0, %c0_i32 : i32, i32
  }
  func.func @transform_2(%arg0: i32) -> (i32, i32) {
    %c0_i32 = arith.constant 0 : i32
    %c0_i32_0 = arith.constant 0 : i32
    %c0_i32_1 = arith.constant 0 : i32
    return %c0_i32, %c0_i32_0 : i32, i32
  }
  func.func @transform_3(%arg0: i32) -> (i32, i32) {
    %c0_i32 = arith.constant 0 : i32
    %c0_i32_0 = arith.constant 0 : i32
    %c0_i32_1 = arith.constant 0 : i32
    return %c0_i32, %c0_i32_0 : i32, i32
  }
  func.func @transform_4(%arg0: i32) -> (i32, i32) {
    %c0_i32 = arith.constant 0 : i32
    %c0_i32_0 = arith.constant 0 : i32
    %c0_i32_1 = arith.constant 0 : i32
    return %c0_i32, %c0_i32_0 : i32, i32
  }
  func.func @transform_5(%arg0: i32) -> (i32, i32) {
    %c0_i32 = arith.constant 0 : i32
    %c0_i32_0 = arith.constant 0 : i32
    %c0_i32_1 = arith.constant 0 : i32
    return %c0_i32, %c0_i32_0 : i32, i32
  }
  func.func @transform_6(%arg0: i32) -> (i32, i32) {
    %c0_i32 = arith.constant 0 : i32
    %c0_i32_0 = arith.constant 0 : i32
    %c0_i32_1 = arith.constant 0 : i32
    return %c0_i32, %c0_i32_0 : i32, i32
  }
  func.func @transform_7(%arg0: i32) -> (i32, i32) {
    %c0_i32 = arith.constant 0 : i32
    %c0_i32_0 = arith.constant 0 : i32
    %c0_i32_1 = arith.constant 0 : i32
    return %c0_i32, %c0_i32_0 : i32, i32
  }
  func.func @transform_8(%arg0: i32) -> (i32, i32) {
    %c0_i32 = arith.constant 0 : i32
    %c0_i32_0 = arith.constant 0 : i32
    %c0_i32_1 = arith.constant 0 : i32
    return %c0_i32, %c0_i32_0 : i32, i32
  }
  func.func @transform_9(%arg0: i32) -> (i32, i32) {
    %c0_i32 = arith.constant 0 : i32
    %c0_i32_0 = arith.constant 0 : i32
    return %arg0, %c0_i32 : i32, i32
  }
}

</mosaic_0001>

<bundles_post_ra>
// kernel: critic_d4pg_forward.1
= control target key start
LH: loop header
LB: loop body
LE: loop exit
PB: predicated region body
PF: predicated region fallthrough
CT: control target
= control target key end

     0   :  { %v608_v2 = vmov 0.0|0.0   ;;  %vm609_vm0 = vmmov 0   ;;  %v610_v4 = vmov 0.0   ;;  %vm140_vm1 = vcmask 1043456   ;;  %s815_s0 = inlined_call_operand.vmem [shape: f32[8,16], index: 0, kind: input, shape index: {}]   ;;  %s816_s1 = inlined_call_operand.vmem [shape: f32[8,4], index: 1, kind: input, shape index: {}]   ;;  %s817_s2 = inlined_call_operand.vmem [shape: f32[16,128], index: 2, kind: input, shape index: {}]   ;;  %s818_s3 = inlined_call_operand.vmem [shape: f32[1,128], index: 3, kind: input, shape index: {}]   ;;  %s819_s4 = inlined_call_operand.vmem [shape: f32[128,128], index: 4, kind: input, shape index: {}]   ;;  %s820_s5 = inlined_call_operand.vmem [shape: f32[4,128], index: 5, kind: input, shape index: {}]   ;;  %s821_s6 = inlined_call_operand.vmem [shape: f32[1,128], index: 6, kind: input, shape index: {}]   ;;  %s822_s7 = inlined_call_operand.vmem [shape: f32[128,51], index: 7, kind: input, shape index: {}]   ;;  %s823_s8 = inlined_call_operand.vmem [shape: f32[1,51], index: 8, kind: input, shape index: {}]   ;;  %s824_s9 = inlined_call_operand.hbm [shape: f32[8,51], index: 9, kind: output, shape index: {}]  }
   0x1   :  { %v34_v0 = vld [vmem:[%s817_s2] sm:$0xff]  ;;  %v35_v1 = vld [vmem:[%s817_s2 + $0x8] sm:$0xff]  ;;  %529 = vmatprep.subr.bf16.mxu0 %v608_v2  ;;  %451 = vmatprep.mubr.msk.f32.mxu0 %vm609_vm0, %v610_v4  ;;  %vm136_vm2 = vcmask 31744   ;;  %v120_v9 = vld [vmem:[%s819_s4 + $0x10] sm:$0xff]  ;;  %vm43_vm3 = vcmask 130048  }
   0x2   :  { %v530_v3 = vpack.c.bf16 %v35_v1, %v34_v0  ;;  %v135_v5 = vld [vmem:[%s820_s5] sm:$0xf]  ;;  %454 = vmatprep.subr.mxu1 %v610_v4  ;;  %456 = vmatprep.mubr.msk.f32.mxu1 %vm609_vm0, %v610_v4  ;;  %v119_v8 = vld [vmem:[%s819_s4 + $0x8] sm:$0xff]  ;;  %v121_v12 = vld [vmem:[%s819_s4 + $0x18] sm:$0xff] }
   0x3   :  { %v134_v6 = vld [vmem:[%s816_s1] sm:$0xff]  ;;  %455 = vmatpush3.msk.msra.mxu1 %vm140_vm1, %v135_v5  ;;  %v536_v13 = vpack.c.bf16 %v121_v12, %v120_v9  ;;  %v123_v15 = vld [vmem:[%s819_s4 + $0x28] sm:$0xff] }
   0x4   :  { %v118_v7 = vld [vmem:[%s819_s4] sm:$0xff]  ;;  %531 = vmatpush3.bf16.msra.mxu0 %v530_v3  ;;  %457 = vmatmul.mubr.msk.f32.vlgmr.msra.gmra.mrb[0].mxu1 %vm136_vm2, %v134_v6 }
   0x5   :  { %v33_v10 = vld [vmem:[%s815_s0] sm:$0xff]  ;;  %v533_v11 = vpack.c.bf16 %v119_v8, %v118_v7  ;;  %532 = vmatprep.subr.bf16.mxu1 %v608_v2  ;;  %491 = vmatprep.mubr.msk.f32.mxu1 %vm609_vm0, %v610_v4 }
   0x6   :  { %v122_v14 = vld [vmem:[%s819_s4 + $0x20] sm:$0xff]  ;;  %556 = vmatprep.subr.bf16.mxu0 %v608_v2 }
   0x7   :  { %534 = vmatpush3.bf16.msra.mxu1 %v533_v11  ;;  %452 = vmatmul.mubr.msk.f32.vlgmr.msra.gmra.mrb[0].mxu0 %vm43_vm3, %v33_v10 }
   0x8   :  { %535 = vmatprep.subr.bf16.mxu1 %v608_v2  ;;  %526 = vmatprep.mubr.msk.f32.mxu0 %vm609_vm0, %v610_v4 }
   0x9   :  { %14 = vsyncpa [#allocation3], 0  ;;  %v539_v16 = vpack.c.bf16 %v123_v15, %v122_v14  ;;  %v124_v17 = vld [vmem:[%s819_s4 + $0x30] sm:$0xff]  ;;  %v125_v18 = vld [vmem:[%s819_s4 + $0x38] sm:$0xff]  ;;  %s611_s11 = smov [#allocation2]   ;;  %vm386_vm4 = vcmask 416768  }
   0xa   :  { %v542_v19 = vpack.c.bf16 %v125_v18, %v124_v17  ;;  %v126_v20 = vld [vmem:[%s819_s4 + $0x40] sm:$0xff]  ;;  %v127_v21 = vld [vmem:[%s819_s4 + $0x48] sm:$0xff]  ;;  %v128_v23 = vld [vmem:[%s819_s4 + $0x50] sm:$0xff]  ;;  %s394_s12 = sshll.u32 %s611_s11, 4  ;;  %s395_s12 = int_to_ptr.vmem [resolvable:$true] %s394_s12 }
   0xb   :  { %537 = vmatpush3.bf16.msra.mxu1 %v536_v13  ;;  %v545_v22 = vpack.c.bf16 %v127_v21, %v126_v20  ;;  %v129_v24 = vld [vmem:[%s819_s4 + $0x58] sm:$0xff]  ;;  %v130_v26 = vld [vmem:[%s819_s4 + $0x60] sm:$0xff]  ;;  %v131_v27 = vld [vmem:[%s819_s4 + $0x68] sm:$0xff]  ;;  %p589_p1 = scmp.lt.s32.totalorder %s395_s12, %s395_s12 }
   0xc   :  { %538 = vmatprep.subr.bf16.mxu1 %v608_v2  ;;  %v548_v25 = vpack.c.bf16 %v129_v24, %v128_v23  ;;  %v551_v28 = vpack.c.bf16 %v131_v27, %v130_v26  ;;  %v132_v29 = vld [vmem:[%s819_s4 + $0x70] sm:$0xff]  ;;  %v133_v30 = vld [vmem:[%s819_s4 + $0x78] sm:$0xff]  ;;  %v293_v32 = vld [vmem:[%s822_s7] sm:$0xff] }
   0xd   :  { %v554_v31 = vpack.c.bf16 %v133_v30, %v132_v29  ;;  %v294_v33 = vld [vmem:[%s822_s7 + $0x8] sm:$0xff]  ;;  %v295_v34 = vld [vmem:[%s822_s7 + $0x10] sm:$0xff]  ;;  %v296_v36 = vld [vmem:[%s822_s7 + $0x18] sm:$0xff] }
   0xe   :  { %v557_v35 = vpack.c.bf16 %v294_v33, %v293_v32  ;;  %v560_v37 = vpack.c.bf16 %v296_v36, %v295_v34  ;;  %v297_v38 = vld [vmem:[%s822_s7 + $0x20] sm:$0xff]  ;;  %v298_v39 = vld [vmem:[%s822_s7 + $0x28] sm:$0xff]  ;;  %v299_v41 = vld [vmem:[%s822_s7 + $0x30] sm:$0xff] }
   0xf   :  { %540 = vmatpush3.bf16.msra.mxu1 %v539_v16  ;;  %v563_v40 = vpack.c.bf16 %v298_v39, %v297_v38  ;;  %v300_v42 = vld [vmem:[%s822_s7 + $0x38] sm:$0xff]  ;;  %v301_v44 = vld [vmem:[%s822_s7 + $0x40] sm:$0xff]  ;;  %v302_v45 = vld [vmem:[%s822_s7 + $0x48] sm:$0xff] }
  0x10   :  { %541 = vmatprep.subr.bf16.mxu1 %v608_v2  ;;  %558 = vmatpush3.bf16.msra.mxu0 %v557_v35  ;;  %v566_v43 = vpack.c.bf16 %v300_v42, %v299_v41  ;;  %v569_v46 = vpack.c.bf16 %v302_v45, %v301_v44  ;;  %v303_v47 = vld [vmem:[%s822_s7 + $0x50] sm:$0xff]  ;;  %v304_v48 = vld [vmem:[%s822_s7 + $0x58] sm:$0xff]  ;;  %v402_v50 = vld [vmem:[%s818_s3] ss:$0 sm:$0xff] }
  0x11   :  { %559 = vmatprep.subr.bf16.mxu0 %v608_v2  ;;  %v572_v49 = vpack.c.bf16 %v304_v48, %v303_v47  ;;  %v305_v57 = vld [vmem:[%s822_s7 + $0x60] sm:$0xff]  ;;  %v306_v58 = vld [vmem:[%s822_s7 + $0x68] sm:$0xff]  ;;  %v307_v60 = vld [vmem:[%s822_s7 + $0x70] sm:$0xff] }
  0x12   :  { %v575_v59 = vpack.c.bf16 %v306_v58, %v305_v57  ;;  %v308_v61 = vld [vmem:[%s822_s7 + $0x78] sm:$0xff]  ;;  %v406_v0 = vld [vmem:[%s821_s6] ss:$0 sm:$0xff]  ;;  %s584_s7 = scalar_lea.vmem %s395_s12, 128 }
  0x13   :  { %543 = vmatpush3.bf16.msra.mxu1 %v542_v19  ;;  %v578_v62 = vpack.c.bf16 %v308_v61, %v307_v60  ;;  %p585_p0 = scmp.ne.s32.totalorder %s395_s12, %s584_s7  ;;  %p590_p2 = scmp.lt.s32.totalorder %s584_s7, %s584_s7 }
  0x14   :  { %544 = vmatprep.subr.bf16.mxu1 %v608_v2  ;;  %561 = vmatpush3.bf16.msra.mxu0 %v560_v37 }
  0x15   :  { %562 = vmatprep.subr.bf16.mxu0 %v608_v2  ;;  %p591_p3 = por %p590_p2, %p589_p1 }
  0x17   :  { %546 = vmatpush3.bf16.msra.mxu1 %v545_v22  ;;  %p592_p4 = pnand %p591_p3, %p585_p0 }
  0x18   :  { %547 = vmatprep.subr.bf16.mxu1 %v608_v2  ;;  %564 = vmatpush3.bf16.msra.mxu0 %v563_v40 }
  0x19   :  { %565 = vmatprep.subr.bf16.mxu0 %v608_v2 }
  0x1b   :  { %549 = vmatpush3.bf16.msra.mxu1 %v548_v25 }
  0x1c   :  { %550 = vmatprep.subr.bf16.mxu1 %v608_v2  ;;  %567 = vmatpush3.bf16.msra.mxu0 %v566_v43 }
  0x1d   :  { %568 = vmatprep.subr.bf16.mxu0 %v608_v2 }
  0x1f   :  { %552 = vmatpush3.bf16.msra.mxu1 %v551_v28 }
  0x20   :  { %553 = vmatprep.subr.bf16.mxu1 %v608_v2  ;;  %570 = vmatpush3.bf16.msra.mxu0 %v569_v46 }
  0x21   :  { %571 = vmatprep.subr.bf16.mxu0 %v608_v2 }
  0x23   :  { %555 = vmatpush3.bf16.msra.mxu1 %v554_v31 }
  0x24   :  { %573 = vmatpush3.bf16.msra.mxu0 %v572_v49 }
  0x25   :  { %574 = vmatprep.subr.bf16.mxu0 %v608_v2 }
  0x28   :  { %576 = vmatpush3.bf16.msra.mxu0 %v575_v59 }
  0x29   :  { %577 = vmatprep.subr.bf16.mxu0 %v608_v2  ;;  %v407_v2 = vld [vmem:[%s823_s8] ss:$0 sm:$0xff] }
  0x2c   :  { %579 = vmatpush3.bf16.msra.mxu0 %v578_v62 }
  0xd7   :  { %v210_v51 = vpop.f32.mrb[0].mxu1 }
  0xd8   :  { %v458_v52 = vpop.f32.mrb[1].mxu1 }
  0xda   :  { %v113_v53 = vpop.f32.mrb[0].mxu0 }
  0xdb   :  { %v114_v54 = vadd.f32 %v402_v50, %v113_v53  ;;  %v453_v55 = vpop.f32.mrb[1].mxu0 }
  0xdd   :  { %v117_v56 = vmax.f32 %v114_v54, 0.0 }
  0xdf   :  { %492 = vmatmul.mubr.f32.vlgmr.msra.gmra.mrb[2].mxu1 %v117_v56 }
 0x1b2   :  { %v280_v63 = vpop.f32.mrb[2].mxu1 }
 0x1b3   :  { %v281_v1 = vadd.f32 %v280_v63, %v210_v51  ;;  %v493_v3 = vpop.f32.mrb[3].mxu1 }
 0x1b5   :  { %v291_v4 = vadd.f32 %v406_v0, %v281_v1 }
 0x1b7   :  { %v292_v5 = vmax.f32 %v291_v4, 0.0 }
 0x1b9   :  { %527 = vmatmul.mubr.f32.vlgmr.msra.gmra.mrb[2].mxu0 %v292_v5 }
 0x28c   :  { %v382_v6 = vpop.f32.mrb[2].mxu0 }
 0x28d   :  { %v383_v7 = vadd.f32 %v407_v2, %v382_v6  ;;  %v528_v8 = vpop.f32.mrb[3].mxu0 }
 0x28f   :  { %387 = vst.msk [vmem:[#allocation2] sm:$0xff] %vm386_vm4, %v383_v7 }
 0x290   :  { %595 = shalt.err (!%p592_p4)
}
 0x291   :  { %s596_s14 = scalar_lea.hbm %s824_s9, 128 }
 0x292   :  { %p597_p5 = scmp.ne.s32.totalorder %s824_s9, %s596_s14  ;;  %p600_p6 = scmp.lt.u32.totalorder %s596_s14, %s824_s9 }
 0x294   :  { %p602_p7 = pnand %p600_p6, %p597_p5 }
 0x296   :  { %605 = shalt.err (!%p602_p7)
}
 0x297   :  { %397 = dma.vmem_to_hbm [thread:$0]  %s395_s12, 128, %s824_s9, [#allocation3]  }
 0x298   :  { %606 = dma.done.wait [#allocation3], 128  }
 0x299   :  { %607 = vsyncadd [#allocation3], 4294967168 }
 0x29a   :  { %401 = vsyncpa [#allocation3], 1 }

</bundles_post_ra>
